<compile_context>
chip_gen: v6e
topology: v6e:2x2x1
jax: 0.10.0
libtpu: 0.0.40
codegen_flags: <defaults>
</compile_context>

<pallas_src>
import functools

import jax
import jax.numpy as jnp
from jax.experimental import pallas as pl
from jax.experimental.pallas import tpu as pltpu


def _blur_kernel(coef_ref, x_ref, o_ref, *, row_len):
    """One grid step: blur a (bB, L) slab of flattened planes (L = H*W)."""
    x = x_ref[...].astype(jnp.float32)                 # (bB, L)
    L = x.shape[-1]

    a = coef_ref[0:1, :]   # coeff of x[p-1]  (horizontal, {0,1,2})
    b = coef_ref[1:2, :]   # coeff of x[p+1]  (horizontal, {0,1,2})
    c = coef_ref[2:3, :]   # coeff of h[p-W]  (vertical,   {0,1,2}/16)
    d = coef_ref[3:4, :]   # coeff of h[p+W]  (vertical,   {0,1,2}/16)

    # Horizontal [1,2,1] pass.  pltpu.roll rotates along the lane axis only,
    # so data never leaves its own plane (sublane row); reflect boundaries
    # are handled by the precomputed per-lane coefficients.
    left = pltpu.roll(x, 1 % L, axis=1)                # left[p]  = x[p-1]
    right = pltpu.roll(x, (L - 1) % L, axis=1)         # right[p] = x[p+1]
    h = a * left + 2.0 * x + b * right

    # Vertical [1,2,1] pass: same-column neighbours sit row_len lanes away.
    # The 1/16 normalization is folded into c, d and the 0.125 centre tap.
    up = pltpu.roll(h, row_len % L, axis=1)            # up[p]   = h[p-W]
    down = pltpu.roll(h, (L - row_len) % L, axis=1)    # down[p] = h[p+W]
    o_ref[...] = (c * up + 0.125 * h + d * down).astype(o_ref.dtype)


@functools.lru_cache(maxsize=None)
def _roll_matches_jnp():
    """True iff pltpu.roll(x, +1) == jnp.roll(x, +1)  (result[i] = x[i-1]).

    Probed once on the actual device so the reflect-boundary taps are paired
    with the correct shift direction regardless of the roll convention.
    """
    def probe(o_ref):
        col = jax.lax.broadcasted_iota(jnp.float32, (8, 128), 1)
        o_ref[...] = pltpu.roll(col, 1, axis=1)

    try:
        r = pl.pallas_call(
            probe, out_shape=jax.ShapeDtypeStruct((8, 128), jnp.float32))()
        return bool(jax.device_get(r[0, 1]) == 0.0)
    except Exception:
        return True


def _boundary_coefficients(H, W):
    """Per-lane taps for the flattened (H*W,) plane layout.

    Rows 0/1: horizontal left/right neighbour coefficients in {0,1,2}
              (reflect: column 0 reuses column 1, column W-1 reuses W-2).
    Rows 2/3: vertical up/down neighbour coefficients in {0,1,2}/16
              (reflect on rows; the 1/16 normalization folded in).
    """
    L = H * W
    p = jnp.arange(L, dtype=jnp.int32)
    w = p % W
    a = jnp.where(w == 0, 0.0, jnp.where(w == W - 1, 2.0, 1.0))
    b = jnp.where(w == W - 1, 0.0, jnp.where(w == 0, 2.0, 1.0))
    r0 = p < W
    rN = p >= (H - 1) * W
    c = jnp.where(r0, 0.0, jnp.where(rN, 2.0, 1.0)) * (1.0 / 16.0)
    d = jnp.where(rN, 0.0, jnp.where(r0, 2.0, 1.0)) * (1.0 / 16.0)
    return jnp.stack([a, b, c, d]).astype(jnp.float32)      # (4, L)


def blur_forward(x, *, max_block_bytes=None, vmem_limit_bytes=None):
    """3x3 normalized binomial blur of x: (N, C, H, W) -> same shape/dtype."""
    N, C, H, W = x.shape
    B, L = N * C, H * W
    # TODO(synk): H < 2 or W < 2 makes reflect padding undefined (PyTorch
    # rejects it); this path still runs but the border handling is not
    # meaningful for those degenerate sizes.

    # Flatten each plane onto the lane axis (free contiguous reshape).
    x_flat = x.reshape(B, L)

    # Chip-aware budgets: v7x has 2 TensorCores and only 64 MiB VMEM per TC;
    # v5e/v6e have a single TC and 128 MiB physical VMEM.
    try:
        kind = jax.devices()[0].device_kind.lower()
    except Exception:
        kind = ""
    two_tc = "v7" in kind
    if max_block_bytes is None:
        max_block_bytes = (2 << 20) if two_tc else (4 << 20)

    plane_f32_bytes = L * 4                      # budget against the f32 temps
    bB = max(1, min(B, max_block_bytes // max(plane_f32_bytes, 1)))
    if two_tc and B >= 2:
        bB = min(bB, pl.cdiv(B, 2))              # >=2 grid steps => both TCs busy
    if bB < B:
        bB = min(B, max(8, (bB // 8) * 8))       # sublane-aligned (8,128) blocks
    grid = pl.cdiv(B, bB)                        # ragged last block: rows past B
                                                 # are never written; no op mixes
                                                 # sublane rows, so it is safe.
    # TODO(synk): very large planes (>~1 MiB each) would additionally need
    # spatial (H) tiling with a 1-row halo to bound VMEM on v7x.

    itemsize = jnp.dtype(x.dtype).itemsize
    block_in_bytes = bB * L * itemsize
    block_f32_bytes = bB * L * 4
    if vmem_limit_bytes is None:
        phys = (64 << 20) if two_tc else (128 << 20)
        need = 4 * block_in_bytes + 6 * block_f32_bytes + (2 << 20)
        vmem_limit_bytes = int(min(phys - (8 << 20), max(need, 32 << 20)))

    coef = _boundary_coefficients(H, W)
    if not _roll_matches_jnp():                  # pair taps with roll direction
        coef = coef[jnp.array([1, 0, 3, 2])]

    out_flat = pl.pallas_call(
        functools.partial(_blur_kernel, row_len=W),
        out_shape=jax.ShapeDtypeStruct((B, L), x.dtype),
        grid_spec=pltpu.PrefetchScalarGridSpec(
            num_scalar_prefetch=0,
            grid=(grid,),
            in_specs=[
                pl.BlockSpec((4, L), lambda i: (0, 0)),     # taps: fetched once
                pl.BlockSpec((bB, L), lambda i: (i, 0)),
            ],
            out_specs=pl.BlockSpec((bB, L), lambda i: (i, 0)),
        ),
        compiler_params=pltpu.CompilerParams(
            dimension_semantics=("parallel",),
            vmem_limit_bytes=vmem_limit_bytes),
    )(coef, x_flat)
    return out_flat.reshape(N, C, H, W)


def _reference(x):
    # Independent pure-JAX reference: direct 3x3 correlation with the
    # normalized binomial kernel and reflect padding (kornia filter2D).
    k = jnp.array([1.0, 2.0, 1.0], dtype=jnp.float32)
    k2 = k[:, None] * k[None, :]
    k2 = k2 / jnp.sum(k2)
    xp = jnp.pad(x.astype(jnp.float32),
                 ((0, 0), (0, 0), (1, 1), (1, 1)), mode="reflect")
    _, _, H, W = x.shape
    out = jnp.zeros(x.shape, jnp.float32)
    for di in range(3):
        for dj in range(3):
            out = out + k2[di, dj] * xp[:, :, di:di + H, dj:dj + W]
    return out.astype(x.dtype)


if __name__ == "__main__":
    key = jax.random.PRNGKey(0)
    N, C, H, W = 2, 4, 16, 16
    x = jax.random.normal(key, (N, C, H, W), dtype=jnp.float32)

    out = jax.block_until_ready(blur_forward(x))

    ref = _reference(x)
    assert out.shape == (N, C, H, W)
    err = float(jnp.max(jnp.abs(out - ref)))
    assert err < 1e-5, f"max abs error {err}"

    print("KERNEL_OK")
</pallas_src>

<mosaic_0001>
module attributes {stable_mosaic.version = 11 : i64} {
  func.func @_blur_kernel(%arg0: i32, %arg1: memref<4x256xf32, #tpu.memory_space<vmem>>, %arg2: memref<8x256xf32, #tpu.memory_space<vmem>>, %arg3: memref<8x256xf32, #tpu.memory_space<vmem>>) attributes {dimension_semantics = [#tpu.dimension_semantics<parallel>], iteration_bounds = array<i64: 1>, scalar_prefetch = 0 : i64, scratch_operands = 0 : i64, tpu.core_type = #tpu.core_type<tc>, window_params = [{pipeline_mode = #tpu.pipeline_mode<synchronous>, transform_indices = @transform_0, window_bounds = array<i64: 4, 256>}, {transform_indices = @transform_1, window_bounds = array<i64: 8, 256>}, {transform_indices = @transform_2, window_bounds = array<i64: 8, 256>}]} {
    %c0 = arith.constant 0 : index
    %c0_0 = arith.constant 0 : index
    %0 = vector.load %arg2[%c0, %c0_0] : memref<8x256xf32, #tpu.memory_space<vmem>>, vector<8x256xf32>
    %c0_1 = arith.constant 0 : index
    %c0_2 = arith.constant 0 : index
    %1 = vector.load %arg1[%c0_1, %c0_2] : memref<4x256xf32, #tpu.memory_space<vmem>>, vector<1x256xf32>
    %c1 = arith.constant 1 : index
    %c0_3 = arith.constant 0 : index
    %2 = vector.load %arg1[%c1, %c0_3] : memref<4x256xf32, #tpu.memory_space<vmem>>, vector<1x256xf32>
    %c2 = arith.constant 2 : index
    %c0_4 = arith.constant 0 : index
    %3 = vector.load %arg1[%c2, %c0_4] : memref<4x256xf32, #tpu.memory_space<vmem>>, vector<1x256xf32>
    %c3 = arith.constant 3 : index
    %c0_5 = arith.constant 0 : index
    %4 = vector.load %arg1[%c3, %c0_5] : memref<4x256xf32, #tpu.memory_space<vmem>>, vector<1x256xf32>
    %c1_i32 = arith.constant 1 : i32
    %5 = tpu.dynamic_rotate %0 by %c1_i32 dim 1 : vector<8x256xf32>, i32 -> vector<8x256xf32>
    %c255_i32 = arith.constant 255 : i32
    %6 = tpu.dynamic_rotate %0 by %c255_i32 dim 1 : vector<8x256xf32>, i32 -> vector<8x256xf32>
    %7 = vector.broadcast %1 : vector<1x256xf32> to vector<8x256xf32>
    %8 = arith.mulf %7, %5 : vector<8x256xf32>
    %cst = arith.constant 2.000000e+00 : f32
    %9 = vector.broadcast %cst : f32 to vector<8x256xf32>
    %10 = arith.mulf %9, %0 : vector<8x256xf32>
    %11 = arith.addf %8, %10 : vector<8x256xf32>
    %12 = vector.broadcast %2 : vector<1x256xf32> to vector<8x256xf32>
    %13 = arith.mulf %12, %6 : vector<8x256xf32>
    %14 = arith.addf %11, %13 : vector<8x256xf32>
    %c16_i32 = arith.constant 16 : i32
    %15 = tpu.dynamic_rotate %14 by %c16_i32 dim 1 : vector<8x256xf32>, i32 -> vector<8x256xf32>
    %c240_i32 = arith.constant 240 : i32
    %16 = tpu.dynamic_rotate %14 by %c240_i32 dim 1 : vector<8x256xf32>, i32 -> vector<8x256xf32>
    %17 = vector.broadcast %3 : vector<1x256xf32> to vector<8x256xf32>
    %18 = arith.mulf %17, %15 : vector<8x256xf32>
    %cst_6 = arith.constant 1.250000e-01 : f32
    %19 = vector.broadcast %cst_6 : f32 to vector<8x256xf32>
    %20 = arith.mulf %19, %14 : vector<8x256xf32>
    %21 = arith.addf %18, %20 : vector<8x256xf32>
    %22 = vector.broadcast %4 : vector<1x256xf32> to vector<8x256xf32>
    %23 = arith.mulf %22, %16 : vector<8x256xf32>
    %24 = arith.addf %21, %23 : vector<8x256xf32>
    %c0_7 = arith.constant 0 : index
    %c0_8 = arith.constant 0 : index
    %25 = vector.load %arg3[%c0_7, %c0_8] : memref<8x256xf32, #tpu.memory_space<vmem>>, vector<8x256xf32>
    tpu.vector_store %arg3[%c0_7, %c0_8], %24 {strides = array<i32>} : memref<8x256xf32, #tpu.memory_space<vmem>>, vector<8x256xf32>,
    return
  }
  func.func @transform_0(%arg0: i32) -> (i32, i32) {
    %c0_i32 = arith.constant 0 : i32
    %c0_i32_0 = arith.constant 0 : i32
    %c0_i32_1 = arith.constant 0 : i32
    return %c0_i32, %c0_i32_0 : i32, i32
  }
  func.func @transform_1(%arg0: i32) -> (i32, i32) {
    %c0_i32 = arith.constant 0 : i32
    %c0_i32_0 = arith.constant 0 : i32
    return %arg0, %c0_i32 : i32, i32
  }
  func.func @transform_2(%arg0: i32) -> (i32, i32) {
    %c0_i32 = arith.constant 0 : i32
    %c0_i32_0 = arith.constant 0 : i32
    return %arg0, %c0_i32 : i32, i32
  }
}

</mosaic_0001>

<bundles_post_ra>
// kernel: tpu_custom_call.1
= control target key start
LH: loop header
LB: loop body
LE: loop exit
PB: predicated region body
PF: predicated region fallthrough
CT: control target
= control target key end

     0   :  { %7 = vsyncpa [#allocation3], 0  ;;  %s261_s0 = inlined_call_operand.hbm [shape: f32[4,256], index: 0, kind: input, shape index: {}]   ;;  %s262_s1 = inlined_call_operand.hbm [shape: f32[8,256], index: 1, kind: input, shape index: {}]   ;;  %s263_s2 = inlined_call_operand.hbm [shape: f32[8,256], index: 2, kind: output, shape index: {}]  }
   0x1   :  { %8 = vsyncpa [#allocation6], 0 }
   0x2   :  { %9 = vsyncpa [#allocation4], 0  ;;  %s230_s9 = smov [#allocation2]   ;;  %s231_s11 = smov [#allocation5]  }
   0x3   :  { %s16_s10 = sshll.u32 %s230_s9, 4  ;;  %s26_s12 = sshll.u32 %s231_s11, 4  ;;  %s17_s10 = int_to_ptr.vmem [resolvable:$true] %s16_s10  ;;  %s27_s12 = int_to_ptr.vmem [resolvable:$true] %s26_s12 }
   0x4   :  { %s172_s13 = scalar_lea.vmem %s17_s10, 128  ;;  %p177_p1 = scmp.lt.s32.totalorder %s17_s10, %s17_s10 }
   0x5   :  { %p173_p0 = scmp.ne.s32.totalorder %s17_s10, %s172_s13  ;;  %p178_p2 = scmp.lt.s32.totalorder %s172_s13, %s172_s13 }
   0x7   :  { %p179_p3 = por %p178_p2, %p177_p1 }
   0x9   :  { %p180_p4 = pnand %p179_p3, %p173_p0 }
   0xb   :  { %183 = shalt.err (!%p180_p4)
}
   0xc   :  { %19 = dma.hbm_to_vmem [thread:$0]  %s261_s0, 128, %s17_s10, [#allocation3]  }
   0xd   :  { %s192_s16 = scalar_lea.vmem %s27_s12, 256  ;;  %p197_p6 = scmp.lt.s32.totalorder %s27_s12, %s27_s12 }
   0xe   :  { %p193_p5 = scmp.ne.s32.totalorder %s27_s12, %s192_s16  ;;  %p198_p7 = scmp.lt.s32.totalorder %s192_s16, %s192_s16 }
  0x10   :  { %p199_p8 = por %p198_p7, %p197_p6 }
  0x12   :  { %p200_p9 = pnand %p199_p8, %p193_p5 }
  0x14   :  { %203 = shalt.err (!%p200_p9)
}
  0x15   :  { %29 = dma.hbm_to_vmem [thread:$0]  %s262_s1, 256, %s27_s12, [#allocation6]  }
  0x16   :  { %224 = dma.done.wait [#allocation3], 128  }
  0x17   :  { %225 = vsyncadd [#allocation3], 4294967168 }
  0x18   :  { %226 = dma.done.wait [#allocation6], 256  }
  0x19   :  { %227 = vsyncadd [#allocation6], 4294967040  ;;  %v36_v0 = vld [vmem:[#allocation5] sm:$0xff]  ;;  %s232_s19 = smov 127   ;;  %s233_s20 = smov 1   ;;  %v37_v1 = vld [vmem:[#allocation5 + $0x8] sm:$0xff]  ;;  %v49_v2 = vlaneseq }
  0x1a   :  { %54 = vrot.lane.b32.xlu1 %v36_v0, %s232_s19  ;;  %45 = vrot.lane.b32.xlu0 %v36_v0, %s233_s20  ;;  %v38_v7 = vld [vmem:[#allocation2] ss:$4 sm:$0x3]  ;;  %v40_v10 = vld [vmem:[#allocation2 + $0x1] ss:$4 sm:$0x3] }
  0x1b   :  { %v63_v3 = vshrl.u32 %v49_v2, 7  ;;  %v50_v4 = vand.u32 127, %v49_v2  ;;  %v74_v13 = vmul.f32 2.0, %v36_v0  ;;  %v75_v14 = vmul.f32 2.0, %v37_v1  ;;  %s234_s0 = smov 16   ;;  %s235_s1 = smov 112  }
  0x1c   :  { %v42_v31 = vld [vmem:[#allocation2 + $0x2] ss:$4 sm:$0x3]  ;;  %v44_v34 = vld [vmem:[#allocation2 + $0x3] ss:$4 sm:$0x3] }
  0x1d   :  { %v64_v5 = vsub.s32 0, %v63_v3  ;;  %v68_v6 = vsub.s32 1, %v63_v3  ;;  %vm58_vm0 = vcmp.lt.s32.totalorder %v50_v4, 127  ;;  %vm51_vm1 = vcmp.lt.s32.totalorder %v50_v4, 1  ;;  %s236_s21 = smov [#allocation7]  }
  0x1e   :  { %56 = vrot.lane.b32.xlu1 %v37_v1, %s232_s19  ;;  %47 = vrot.lane.b32.xlu0 %v37_v1, %s233_s20  ;;  %vm97_vm2 = vcmp.lt.s32.totalorder %v50_v4, 16  ;;  %vm104_vm3 = vcmp.lt.s32.totalorder %v50_v4, 112  ;;  %s147_s22 = sshll.u32 %s236_s21, 4  ;;  %s148_s22 = int_to_ptr.vmem [resolvable:$true] %s147_s22 }
  0x1f   :  { %v65_v11 = vrot.slane %v38_v7, %v64_v5  ;;  %v69_v12 = vrot.slane %v38_v7, %v68_v6  ;;  %v82_v15 = vrot.slane %v40_v10, %v64_v5  ;;  %v86_v16 = vrot.slane %v40_v10, %v68_v6  ;;  %s204_s23 = scalar_lea.vmem %s148_s22, 256  ;;  %p209_p11 = scmp.lt.s32.totalorder %s148_s22, %s148_s22 }
  0x20   :  { %v111_v32 = vrot.slane %v42_v31, %v64_v5  ;;  %v115_v33 = vrot.slane %v42_v31, %v68_v6  ;;  %v128_v41 = vrot.slane %v44_v34, %v64_v5  ;;  %v132_v42 = vrot.slane %v44_v34, %v68_v6  ;;  %p205_p10 = scmp.ne.s32.totalorder %s148_s22, %s204_s23  ;;  %p210_p12 = scmp.lt.s32.totalorder %s204_s23, %s204_s23 }
  0x22   :  { %p211_p13 = por %p210_p12, %p209_p11 }
  0x24   :  { %p212_p0 = pnand %p211_p13, %p205_p10 }
  0x8c   :  { %v55_v8 = vpop.permute.xlu1 %54  ;;  %v46_v9 = vpop.permute.xlu0 %45 }
  0x90   :  { %v57_v17 = vpop.permute.xlu1 %56  ;;  %v48_v18 = vpop.permute.xlu0 %47 }
  0x91   :  { %v59_v19 = vsel %vm58_vm0, %v55_v8, %v57_v17  ;;  %v60_v20 = vsel %vm58_vm0, %v57_v17, %v55_v8  ;;  %v52_v21 = vsel %vm51_vm1, %v46_v9, %v48_v18  ;;  %v53_v22 = vsel %vm51_vm1, %v48_v18, %v46_v9 }
  0x92   :  { %v72_v23 = vmul.f32 %v65_v11, %v53_v22  ;;  %v73_v24 = vmul.f32 %v69_v12, %v52_v21  ;;  %v89_v25 = vmul.f32 %v82_v15, %v59_v19  ;;  %v90_v26 = vmul.f32 %v86_v16, %v60_v20 }
  0x94   :  { %v76_v27 = vadd.f32 %v74_v13, %v72_v23  ;;  %v77_v28 = vadd.f32 %v75_v14, %v73_v24 }
  0x96   :  { %v92_v29 = vadd.f32 %v90_v26, %v77_v28  ;;  %v91_v30 = vadd.f32 %v89_v25, %v76_v27 }
  0x98   :  { %95 = vrot.lane.b32.xlu1 %v92_v29, %s234_s0  ;;  %93 = vrot.lane.b32.xlu0 %v91_v30, %s234_s0  ;;  %v121_v43 = vmul.f32 0.125, %v92_v29  ;;  %v120_v44 = vmul.f32 0.125, %v91_v30 }
  0x9c   :  { %102 = vrot.lane.b32.xlu1 %v92_v29, %s235_s1  ;;  %100 = vrot.lane.b32.xlu0 %v91_v30, %s235_s1 }
 0x10a   :  { %v96_v35 = vpop.permute.xlu1 %95  ;;  %v94_v36 = vpop.permute.xlu0 %93 }
 0x10b   :  { %v98_v37 = vsel %vm97_vm2, %v94_v36, %v96_v35  ;;  %v99_v38 = vsel %vm97_vm2, %v96_v35, %v94_v36 }
 0x10c   :  { %v118_v39 = vmul.f32 %v111_v32, %v99_v38  ;;  %v119_v40 = vmul.f32 %v115_v33, %v98_v37 }
 0x10e   :  { %v103_v45 = vpop.permute.xlu1 %102  ;;  %v101_v46 = vpop.permute.xlu0 %100  ;;  %v122_v49 = vadd.f32 %v120_v44, %v118_v39  ;;  %v123_v50 = vadd.f32 %v121_v43, %v119_v40 }
 0x10f   :  { %v105_v47 = vsel %vm104_vm3, %v101_v46, %v103_v45  ;;  %v106_v48 = vsel %vm104_vm3, %v103_v45, %v101_v46 }
 0x110   :  { %v135_v51 = vmul.f32 %v128_v41, %v105_v47  ;;  %v136_v52 = vmul.f32 %v132_v42, %v106_v48 }
 0x112   :  { %v137_v53 = vadd.f32 %v135_v51, %v122_v49  ;;  %v138_v54 = vadd.f32 %v136_v52, %v123_v50 }
 0x114   :  { %139 = vst [vmem:[#allocation7] sm:$0xff] %v137_v53  ;;  %140 = vst [vmem:[#allocation7 + $0x8] sm:$0xff] %v138_v54 }
 0x115   :  { %215 = shalt.err (!%p212_p0)
}
 0x116   :  { %150 = dma.vmem_to_hbm [thread:$0]  %s148_s22, 256, %s263_s2, [#allocation4]  }
 0x117   :  { %228 = dma.done.wait [#allocation4], 256  }
 0x118   :  { %229 = vsyncadd [#allocation4], 4294967040 }
 0x119   :  { %154 = vsyncpa [#allocation3], 1 }
 0x11a   :  { %155 = vsyncpa [#allocation6], 1 }
 0x11b   :  { %156 = vsyncpa [#allocation4], 1 }

</bundles_post_ra>
